<compile_context>
chip_gen: v5e
topology: v5e:2x2
jax: 0.10.0
libtpu: 0.0.40
codegen_flags: <defaults>
</compile_context>

<pallas_src>
import jax
import jax.numpy as jnp
from jax.experimental import pallas as pl
from jax.experimental.pallas import tpu as pltpu


def _round_up(x, m):
    return (x + m - 1) // m * m


def _cdiv(a, b):
    return -(-a // b)


def _pad_axis(a, axis, target):
    pad = target - a.shape[axis]
    if pad == 0:
        return a
    cfg = [(0, 0)] * a.ndim
    cfg[axis] = (0, pad)
    return jnp.pad(a, cfg)


def _noisy_linear_kernel(x_ref, xr_ref, w_ref, wn_ref, c_ref, b_ref, o_ref,
                         acc_w, acc_n):
    k = pl.program_id(2)

    @pl.when(k == 0)
    def _init():
        acc_w[...] = jnp.zeros_like(acc_w)
        acc_n[...] = jnp.zeros_like(acc_n)

    # Two clean MXU pushes per step; no per-tile VPU prework (xr precomputed).
    acc_w[...] += jnp.dot(x_ref[...], w_ref[...],
                          preferred_element_type=jnp.float32)
    acc_n[...] += jnp.dot(xr_ref[...], wn_ref[...],
                          preferred_element_type=jnp.float32)

    @pl.when(k == pl.num_programs(2) - 1)
    def _finalize():
        # c_ref is already sigma * col_noise; b_ref is already the noised bias.
        o_ref[...] = (acc_w[...] + acc_n[...] * c_ref[...]
                      + b_ref[...]).astype(o_ref.dtype)


def noisy_linear_forward(x, weight, weight_noise, bias, bias_noise,
                         row_noise, col_noise, bias_eps, *, sigma=1.0,
                         tm=None, tn=None, tk=None, out_dtype=jnp.float32):
    """Fused NoisyLinear forward.

    x:            [B, in]
    weight:       [in, out]   (cast to bf16 at the boundary)
    weight_noise: [in, out]   (cast to bf16 at the boundary)
    bias, bias_noise, bias_eps: [out]
    row_noise:    [in, 1]     (torch layout)
    col_noise:    [1, out]
    """
    B, in_f = x.shape
    out_f = weight.shape[1]
    sigma = float(sigma)

    # ---- generation-aware VMEM budget -----------------------------------
    try:
        vmem_cap = int(getattr(pltpu.get_tpu_info(), "vmem_capacity_bytes",
                               64 * 2**20))
    except Exception:
        vmem_cap = 64 * 2**20                      # conservative fallback
    if vmem_cap <= 64 * 2**20:                     # v7x: 64 MiB per TensorCore
        vmem_budget = 44 * 2**20
        tn_cap, tk_cap = 1024, 1024
    else:                                          # v5e / v6e: 128 MiB
        vmem_budget = 100 * 2**20
        tn_cap, tk_cap = 2048, 1024

    # ---- tile sizes ------------------------------------------------------
    if tm is None:
        if B <= 256:
            tm = _round_up(B, 8)
        else:
            # Spread B over M tiles of <=256 rows, minimizing M padding.
            tm = _round_up(_cdiv(B, _cdiv(B, 256)), 8)
    if tn is None:
        tn = min(tn_cap, _round_up(out_f, 128))
    if tk is None:
        tk = min(tk_cap, _round_up(in_f, 128))

    out_bytes = jnp.dtype(out_dtype).itemsize

    def _vmem_bytes(tm_, tn_, tk_):
        return (2 * 2 * tm_ * tk_ * 2              # x + xr tiles (bf16, dbl-buf)
                + 2 * 2 * tk_ * tn_ * 2            # W + Wn tiles (bf16, dbl-buf)
                + 2 * 2 * 8 * tn_ * 4              # c + b (sublane-padded, dbl-buf)
                + 2 * tm_ * tn_ * out_bytes        # output tile (dbl-buf)
                + 2 * tm_ * tn_ * 4)               # two f32 accumulators

    # Shrink tiles until the double-buffered footprint fits with headroom.
    while _vmem_bytes(tm, tn, tk) > vmem_budget - 4 * 2**20:
        if tk > 256:
            tk = _round_up(tk // 2, 128)
        elif tn > 256:
            tn = _round_up(tn // 2, 128)
        elif tm > 8:
            tm = _round_up(tm // 2, 8)
        else:
            break

    # Guarantee >=2 "parallel" grid iterations (keeps both v7x TCs busy).
    if (_round_up(B, tm) // tm) * (_round_up(out_f, tn) // tn) == 1 \
            and _round_up(out_f, 128) >= 256:
        tn = max(128, _round_up(_round_up(out_f, 128) // 2, 128))

    Mp = _round_up(B, tm)
    Kp = _round_up(in_f, tk)
    Np = _round_up(out_f, tn)

    # ---- wrapper precompute (O(B*in + out) XLA work) ---------------------
    if weight.dtype != jnp.bfloat16:
        weight = weight.astype(jnp.bfloat16)        # bandwidth guardrail
    if weight_noise.dtype != jnp.bfloat16:
        weight_noise = weight_noise.astype(jnp.bfloat16)

    x32 = x.astype(jnp.float32)
    r = row_noise.reshape(1, in_f).astype(jnp.float32)
    xb = x32.astype(jnp.bfloat16)                   # plain LHS (bf16 stream)
    xr = (x32 * r).astype(jnp.bfloat16)             # row noise folded into LHS
    c_scaled = (sigma * col_noise.reshape(1, out_f)).astype(jnp.float32)
    b_noised = (bias.reshape(1, out_f).astype(jnp.float32)
                + bias_noise.reshape(1, out_f).astype(jnp.float32)
                * (sigma * bias_eps.reshape(1, out_f).astype(jnp.float32)))

    # Zero-padding is mathematically inert for the matmuls / bias terms.
    xp = _pad_axis(_pad_axis(xb, 0, Mp), 1, Kp)
    xrp = _pad_axis(_pad_axis(xr, 0, Mp), 1, Kp)
    wp = _pad_axis(_pad_axis(weight, 0, Kp), 1, Np)
    wnp = _pad_axis(_pad_axis(weight_noise, 0, Kp), 1, Np)
    cp = _pad_axis(c_scaled, 1, Np)
    bp = _pad_axis(b_noised, 1, Np)

    grid = (Mp // tm, Np // tn, Kp // tk)

    vmem_limit = int(min(vmem_budget,
                         max(_vmem_bytes(tm, tn, tk) + 4 * 2**20, 16 * 2**20)))

    cost = pl.CostEstimate(
        flops=2 * 2 * Mp * Kp * Np,
        transcendentals=0,
        bytes_accessed=(2 * Kp * Np * 2                     # W + Wn (bf16)
                        + 2 * Mp * Kp * 2 * (Np // tn)      # x + xr per N tile
                        + Mp * Np * out_bytes + 2 * Np * 4),
    )

    out = pl.pallas_call(
        _noisy_linear_kernel,
        out_shape=jax.ShapeDtypeStruct((Mp, Np), out_dtype),
        grid_spec=pltpu.PrefetchScalarGridSpec(
            num_scalar_prefetch=0,
            grid=grid,
            in_specs=[
                pl.BlockSpec((tm, tk), lambda i, j, k: (i, k)),   # x (bf16)
                pl.BlockSpec((tm, tk), lambda i, j, k: (i, k)),   # x*row_noise (bf16)
                pl.BlockSpec((tk, tn), lambda i, j, k: (k, j)),   # weight (bf16)
                pl.BlockSpec((tk, tn), lambda i, j, k: (k, j)),   # weight_noise (bf16)
                pl.BlockSpec((1, tn), lambda i, j, k: (0, j)),    # sigma*col_noise
                pl.BlockSpec((1, tn), lambda i, j, k: (0, j)),    # noised bias
            ],
            out_specs=pl.BlockSpec((tm, tn), lambda i, j, k: (i, j)),
            scratch_shapes=[pltpu.VMEM((tm, tn), jnp.float32),
                            pltpu.VMEM((tm, tn), jnp.float32)],
        ),
        compiler_params=pltpu.CompilerParams(
            dimension_semantics=("parallel", "parallel", "arbitrary"),
            vmem_limit_bytes=vmem_limit,
        ),
        cost_estimate=cost,
    )(xp, xrp, wp, wnp, cp, bp)

    return out[:B, :out_f]


if __name__ == "__main__":
    in_features = 256
    out_features = 128
    batch = 8
    sigma = 1.0

    key = jax.random.PRNGKey(0)
    k_w, k_wn, k_bn, k_x, k_row, k_col, k_beps = jax.random.split(key, 7)

    # Parameter init mirroring NoisyLinear.__init__ (xavier_uniform), stored bf16.
    limit = float(jnp.sqrt(6.0 / (in_features + out_features)))
    weight = jax.random.uniform(k_w, (in_features, out_features), jnp.float32,
                                -limit, limit).astype(jnp.bfloat16)
    weight_noise = jax.random.uniform(k_wn, (in_features, out_features), jnp.float32,
                                      -limit, limit).astype(jnp.bfloat16)
    bias = jnp.zeros((out_features,), jnp.float32)
    bias_noise = (0.1 / out_features) * jax.random.normal(
        k_bn, (out_features,), jnp.float32)

    # Input and the forward-time random noise draws (torch.randn equivalents).
    x = jax.random.normal(k_x, (batch, in_features), jnp.float32)
    row_noise = jax.random.normal(k_row, (in_features, 1), jnp.float32)
    col_noise = jax.random.normal(k_col, (1, out_features), jnp.float32)
    bias_eps = jax.random.normal(k_beps, (out_features,), jnp.float32)

    # tk=128 -> two K steps in the demo, exercising accumulator init/finalize.
    out = noisy_linear_forward(x, weight, weight_noise, bias, bias_noise,
                               row_noise, col_noise, bias_eps,
                               sigma=sigma, tk=128)
    out = jax.block_until_ready(out)

    # Pure-JAX reference with identical noise and identical bf16 rounding of
    # the MXU operands (documented precision caveat vs a pure-f32 PyTorch run).
    xb_ref = x.astype(jnp.bfloat16)
    xr_ref = (x * row_noise.reshape(1, in_features)).astype(jnp.bfloat16)
    ref = (jnp.dot(xb_ref, weight, preferred_element_type=jnp.float32)
           + jnp.dot(xr_ref, weight_noise, preferred_element_type=jnp.float32)
           * (sigma * col_noise)
           + (bias + bias_noise * (sigma * bias_eps)))

    assert out.shape == (batch, out_features)
    err = float(jnp.max(jnp.abs(out - ref)))
    assert jnp.allclose(out, ref, atol=2e-2, rtol=2e-2), f"max abs err {err}"
    print("KERNEL_OK")
</pallas_src>

<mosaic_0001>
module attributes {stable_mosaic.version = 11 : i64} {
  func.func @_noisy_linear_kernel(%arg0: i32, %arg1: i32, %arg2: i32, %arg3: memref<8x128xbf16, #tpu.memory_space<vmem>>, %arg4: memref<8x128xbf16, #tpu.memory_space<vmem>>, %arg5: memref<128x128xbf16, #tpu.memory_space<vmem>>, %arg6: memref<128x128xbf16, #tpu.memory_space<vmem>>, %arg7: memref<1x128xf32, #tpu.memory_space<vmem>>, %arg8: memref<1x128xf32, #tpu.memory_space<vmem>>, %arg9: memref<8x128xf32, #tpu.memory_space<vmem>>, %arg10: memref<8x128xf32, #tpu.memory_space<vmem>>, %arg11: memref<8x128xf32, #tpu.memory_space<vmem>>) attributes {dimension_semantics = [#tpu.dimension_semantics<parallel>, #tpu.dimension_semantics<parallel>, #tpu.dimension_semantics<arbitrary>], iteration_bounds = array<i64: 1, 1, 2>, scalar_prefetch = 0 : i64, scratch_operands = 2 : i64, tpu.core_type = #tpu.core_type<tc>, window_params = [{transform_indices = @transform_0, window_bounds = array<i64: 8, 128>}, {transform_indices = @transform_1, window_bounds = array<i64: 8, 128>}, {transform_indices = @transform_2, window_bounds = array<i64: 128, 128>}, {transform_indices = @transform_3, window_bounds = array<i64: 128, 128>}, {transform_indices = @transform_4, window_bounds = array<i64: 1, 128>}, {transform_indices = @transform_5, window_bounds = array<i64: 1, 128>}, {transform_indices = @transform_6, window_bounds = array<i64: 8, 128>}]} {
    %c0_i32 = arith.constant 0 : i32
    %0 = arith.cmpi eq, %arg2, %c0_i32 : i32
    %1 = arith.extui %0 : i1 to i32
    %c0_i32_0 = arith.constant 0 : i32
    %2 = arith.cmpi ne, %1, %c0_i32_0 : i32
    scf.if %2 {
      %cst_18 = arith.constant 0.000000e+00 : f32
      %18 = vector.broadcast %cst_18 : f32 to vector<8x128xf32>
      %c0_19 = arith.constant 0 : index
      %c0_20 = arith.constant 0 : index
      %19 = vector.load %arg10[%c0_19, %c0_20] : memref<8x128xf32, #tpu.memory_space<vmem>>, vector<8x128xf32>
      tpu.vector_store %arg10[%c0_19, %c0_20], %18 {strides = array<i32>} : memref<8x128xf32, #tpu.memory_space<vmem>>, vector<8x128xf32>,
      %cst_21 = arith.constant 0.000000e+00 : f32
      %20 = vector.broadcast %cst_21 : f32 to vector<8x128xf32>
      %c0_22 = arith.constant 0 : index
      %c0_23 = arith.constant 0 : index
      %21 = vector.load %arg11[%c0_22, %c0_23] : memref<8x128xf32, #tpu.memory_space<vmem>>, vector<8x128xf32>
      tpu.vector_store %arg11[%c0_22, %c0_23], %20 {strides = array<i32>} : memref<8x128xf32, #tpu.memory_space<vmem>>, vector<8x128xf32>,
    } else {
    }
    %c0 = arith.constant 0 : index
    %c0_1 = arith.constant 0 : index
    %3 = vector.load %arg10[%c0, %c0_1] : memref<8x128xf32, #tpu.memory_space<vmem>>, vector<8x128xf32>
    %c0_2 = arith.constant 0 : index
    %c0_3 = arith.constant 0 : index
    %4 = vector.load %arg3[%c0_2, %c0_3] : memref<8x128xbf16, #tpu.memory_space<vmem>>, vector<8x128xbf16>
    %c0_4 = arith.constant 0 : index
    %c0_5 = arith.constant 0 : index
    %5 = vector.load %arg5[%c0_4, %c0_5] : memref<128x128xbf16, #tpu.memory_space<vmem>>, vector<128x128xbf16>
    %cst = arith.constant dense<0.000000e+00> : vector<8x128xf32>
    %6 = tpu.matmul %4, %5, %cst {dimension_numbers = #tpu.dot_dimension_numbers<[1], [0], [0], [1], [0, 0, 1, 1], [], []>} : vector<8x128xbf16>, vector<128x128xbf16>, vector<8x128xf32> -> vector<8x128xf32>
    %7 = arith.addf %3, %6 : vector<8x128xf32>
    %c0_6 = arith.constant 0 : index
    %c0_7 = arith.constant 0 : index
    %8 = vector.load %arg10[%c0_6, %c0_7] : memref<8x128xf32, #tpu.memory_space<vmem>>, vector<8x128xf32>
    tpu.vector_store %arg10[%c0_6, %c0_7], %7 {strides = array<i32>} : memref<8x128xf32, #tpu.memory_space<vmem>>, vector<8x128xf32>,
    %c0_8 = arith.constant 0 : index
    %c0_9 = arith.constant 0 : index
    %9 = vector.load %arg11[%c0_8, %c0_9] : memref<8x128xf32, #tpu.memory_space<vmem>>, vector<8x128xf32>
    %c0_10 = arith.constant 0 : index
    %c0_11 = arith.constant 0 : index
    %10 = vector.load %arg4[%c0_10, %c0_11] : memref<8x128xbf16, #tpu.memory_space<vmem>>, vector<8x128xbf16>
    %c0_12 = arith.constant 0 : index
    %c0_13 = arith.constant 0 : index
    %11 = vector.load %arg6[%c0_12, %c0_13] : memref<128x128xbf16, #tpu.memory_space<vmem>>, vector<128x128xbf16>
    %cst_14 = arith.constant dense<0.000000e+00> : vector<8x128xf32>
    %12 = tpu.matmul %10, %11, %cst_14 {dimension_numbers = #tpu.dot_dimension_numbers<[1], [0], [0], [1], [0, 0, 1, 1], [], []>} : vector<8x128xbf16>, vector<128x128xbf16>, vector<8x128xf32> -> vector<8x128xf32>
    %13 = arith.addf %9, %12 : vector<8x128xf32>
    %c0_15 = arith.constant 0 : index
    %c0_16 = arith.constant 0 : index
    %14 = vector.load %arg11[%c0_15, %c0_16] : memref<8x128xf32, #tpu.memory_space<vmem>>, vector<8x128xf32>
    tpu.vector_store %arg11[%c0_15, %c0_16], %13 {strides = array<i32>} : memref<8x128xf32, #tpu.memory_space<vmem>>, vector<8x128xf32>,
    %c1_i32 = arith.constant 1 : i32
    %15 = arith.cmpi eq, %arg2, %c1_i32 : i32
    %16 = arith.extui %15 : i1 to i32
    %c0_i32_17 = arith.constant 0 : i32
    %17 = arith.cmpi ne, %16, %c0_i32_17 : i32
    scf.if %17 {
      %c0_18 = arith.constant 0 : index
      %c0_19 = arith.constant 0 : index
      %18 = vector.load %arg10[%c0_18, %c0_19] : memref<8x128xf32, #tpu.memory_space<vmem>>, vector<8x128xf32>
      %c0_20 = arith.constant 0 : index
      %c0_21 = arith.constant 0 : index
      %19 = vector.load %arg11[%c0_20, %c0_21] : memref<8x128xf32, #tpu.memory_space<vmem>>, vector<8x128xf32>
      %c0_22 = arith.constant 0 : index
      %c0_23 = arith.constant 0 : index
      %20 = vector.load %arg7[%c0_22, %c0_23] : memref<1x128xf32, #tpu.memory_space<vmem>>, vector<1x128xf32>
      %21 = vector.broadcast %20 : vector<1x128xf32> to vector<8x128xf32>
      %22 = arith.mulf %19, %21 : vector<8x128xf32>
      %23 = arith.addf %18, %22 : vector<8x128xf32>
      %c0_24 = arith.constant 0 : index
      %c0_25 = arith.constant 0 : index
      %24 = vector.load %arg8[%c0_24, %c0_25] : memref<1x128xf32, #tpu.memory_space<vmem>>, vector<1x128xf32>
      %25 = vector.broadcast %24 : vector<1x128xf32> to vector<8x128xf32>
      %26 = arith.addf %23, %25 : vector<8x128xf32>
      %c0_26 = arith.constant 0 : index
      %c0_27 = arith.constant 0 : index
      %27 = vector.load %arg9[%c0_26, %c0_27] : memref<8x128xf32, #tpu.memory_space<vmem>>, vector<8x128xf32>
      tpu.vector_store %arg9[%c0_26, %c0_27], %26 {strides = array<i32>} : memref<8x128xf32, #tpu.memory_space<vmem>>, vector<8x128xf32>,
    } else {
    }
    return
  }
  func.func @transform_0(%arg0: i32, %arg1: i32, %arg2: i32) -> (i32, i32) {
    %c0_i32 = arith.constant 0 : i32
    return %arg0, %arg2 : i32, i32
  }
  func.func @transform_1(%arg0: i32, %arg1: i32, %arg2: i32) -> (i32, i32) {
    %c0_i32 = arith.constant 0 : i32
    return %arg0, %arg2 : i32, i32
  }
  func.func @transform_2(%arg0: i32, %arg1: i32, %arg2: i32) -> (i32, i32) {
    %c0_i32 = arith.constant 0 : i32
    return %arg2, %arg1 : i32, i32
  }
  func.func @transform_3(%arg0: i32, %arg1: i32, %arg2: i32) -> (i32, i32) {
    %c0_i32 = arith.constant 0 : i32
    return %arg2, %arg1 : i32, i32
  }
  func.func @transform_4(%arg0: i32, %arg1: i32, %arg2: i32) -> (i32, i32) {
    %c0_i32 = arith.constant 0 : i32
    %c0_i32_0 = arith.constant 0 : i32
    return %c0_i32, %arg1 : i32, i32
  }
  func.func @transform_5(%arg0: i32, %arg1: i32, %arg2: i32) -> (i32, i32) {
    %c0_i32 = arith.constant 0 : i32
    %c0_i32_0 = arith.constant 0 : i32
    return %c0_i32, %arg1 : i32, i32
  }
  func.func @transform_6(%arg0: i32, %arg1: i32, %arg2: i32) -> (i32, i32) {
    %c0_i32 = arith.constant 0 : i32
    return %arg0, %arg1 : i32, i32
  }
}

</mosaic_0001>

<bundles_post_ra>
// kernel: tpu_custom_call.1
= control target key start
LH: loop header
LB: loop body
LE: loop exit
PB: predicated region body
PF: predicated region fallthrough
CT: control target
= control target key end

     0   :  { %s1411_s0 = inlined_call_operand.hbm [shape: bf16[8,256], index: 0, kind: input, shape index: {}]   ;;  %s1412_s1 = inlined_call_operand.hbm [shape: bf16[8,256], index: 1, kind: input, shape index: {}]   ;;  %s1413_s2 = inlined_call_operand.hbm [shape: bf16[256,128], index: 2, kind: input, shape index: {}]   ;;  %s1414_s3 = inlined_call_operand.hbm [shape: bf16[256,128], index: 3, kind: input, shape index: {}]   ;;  %s1415_s4 = inlined_call_operand.vmem [shape: f32[1,128], index: 4, kind: input, shape index: {}]   ;;  %s1416_s5 = inlined_call_operand.vmem [shape: f32[1,128], index: 5, kind: input, shape index: {}]   ;;  %s1417_s6 = inlined_call_operand.hbm [shape: f32[8,128], index: 6, kind: output, shape index: {}]  }
   0x1   :  { %1422 = sst [smem:[#allocation22_spill]] %s1412_s1 }
   0x2   :  { %11 = vsyncpa [#allocation5], 0 }
   0x3   :  { %13 = vsyncpa [#allocation5 + $0x1], 0 }
   0x4   :  { %14 = vsyncpa [#allocation8], 0 }
   0x5   :  { %16 = vsyncpa [#allocation8 + $0x1], 0 }
   0x6   :  { %17 = vsyncpa [#allocation11], 0 }
   0x7   :  { %19 = vsyncpa [#allocation11 + $0x1], 0 }
   0x8   :  { %20 = vsyncpa [#allocation6], 0  ;;  %s1249_s21 = smov 0   ;;  %s1251_s22 = smov 0  }
   0x9   :  { %s1253_s23 = smov 0   ;;  %s1255_s24 = smov 0  }
   0xa   :  { %s1257_s25 = smov 0   ;;  %s1259_s26 = smov 0  }
   0xb LB: > { %1423 = sst [smem:[#allocation17_spill]] %s1196_s23  ;;  %s1278_s27 = sadd.s32 4294967295, %s1208_s26   ;;  %s1208_s26 = sphi %s1259_s26, %s26_s26   ;;  %s1204_s25 = sphi %s1257_s25, %s1436_s25   ;;  %s1200_s24 = sphi %s1255_s24, %s1435_s24   ;;  %s1196_s23 = sphi %s1253_s23, %s1434_s23   ;;  %s1192_s22 = sphi %s1251_s22, %s1438_s22   ;;  %s1188_s21 = sphi %s1249_s21, %s1437_s21  }
   0xc   : > { %1424 = sst [smem:[#allocation18_spill]] %s1204_s25  ;;  %s38_s28 = sadd.s32 1, %s1204_s25 }
   0xd   : > { %1425 = sst [smem:[#allocation19_spill]] %s1208_s26  ;;  %p39_p0 = scmp.ge.s32.totalorder %s38_s28, 2 }
   0xe   : > { %s54_s29 = sadd.s32 1, %s1196_s23  ;;  %p61_p1 = scmp.ne.s32.totalorder %s1196_s23, %s1192_s22 }
   0xf   : > { %p62_p2 = scmp.eq.s32.totalorder %s1208_s26, 0  ;;  %s1440_s28 = smov (%p39_p0, %s38_s28), 0 }
  0x10   : > { %1426 = sst [smem:[#allocation20_spill]] %s1440_s28  ;;  %p67_p4 = scmp.ne.s32.totalorder %s1192_s22, %s1188_s21 }
  0x11   : > { %p63_p3 = por %p62_p2, %p61_p1  ;;  %s50_s30 = ssub.s32 %s1204_s25, %s1440_s28 }
  0x12   : > { %p68_p5 = scmp.eq.s32.totalorder %s1278_s27, 0  ;;  %p52_p6 = scmp.eq.s32.totalorder %s50_s30, 0 }
  0x13   : > { %p941_p8 = scmp.lt.s32.totalorder %s1208_s26, 2  ;;  %s1300_s9 = sand.u32 1, %s1196_s23  }
  0x14   : > { %p1291_p7 = por %p68_p5, %p67_p4  ;;  %s814_s10 = sshll.u32 %s1204_s25, 2 }
  0x15   : > { %s1297_s8 = scalar_select %p52_p6, %s1196_s23, %s54_s29  }
  0x16   : > { %s813_s11 = sshll.u32 %s1300_s9, 2  ;;  %p1304_p9 = pnand %p941_p8, %p63_p3 }
  0x17   : > { %1428 = sst [smem:[#allocation21_spill]] %s1297_s8  ;;  %s288_s13 = sand.u32 1, %s1208_s26  }
  0x18   : > { %s1430_s1 = sld [smem:[#allocation22_spill]]  ;;  %s292_s17 = scalar_lea.vmem [#allocation7], %s813_s11 }
  0x19   : > { %s302_s18 = sshll.u32 %s292_s17, 4  ;;  %s817_s20 = sshll.u32 %s1300_s9, 6  ;;  %s303_s18 = int_to_ptr.vmem [resolvable:$true] %s302_s18 }
  0x1a   : > { %s289_s21 = scalar_lea.sflag [#allocation8], %s288_s13  ;;  %s898_s29 = sshll.u32 %s1204_s25, 6 }
  0x1b   : > { %p823_p10 = scmp.ge.s32.totalorder %s1208_s26, 1  ;;  %p353_p11 = scmp.lt.s32.totalorder %s1208_s26, 3 }
  0x1c   : > { %s277_s17 = scalar_lea.hbm %s1411_s0, %s814_s10  ;;  %s268_s13 = scalar_lea.sflag [#allocation5], %s1300_s9 }
  0x1d   : > { %p1318_p12 = pnand %p823_p10, %p353_p11  ;;  %s279_s28 = sshll.u32 %s277_s17, 4  ;;  %s280_s28 = int_to_ptr.hbm [resolvable:$true] %s279_s28 }
  0x1e   : > { %s298_s16 = scalar_lea.hbm %s1430_s1, %s814_s10  ;;  %s319_s25 = scalar_lea.hbm %s1413_s2, %s898_s29 }
  0x1f   : > { %s300_s19 = sshll.u32 %s298_s16, 4  ;;  %s271_s16 = scalar_lea.vmem [#allocation4], %s813_s11  ;;  %s301_s19 = int_to_ptr.hbm [resolvable:$true] %s300_s19 }
  0x20   : > { %934 = dma.hbm_to_vmem [thread:$0]  (!%p1304_p9), %s301_s19, 64, %s303_s18, %s289_s21  }
  0x21   : > { %s281_s1 = sshll.u32 %s271_s16, 4  ;;  %s313_s8 = scalar_lea.vmem [#allocation9], %s817_s20  ;;  %s282_s1 = int_to_ptr.vmem [resolvable:$true] %s281_s1 }
  0x22   : > { %931 = dma.hbm_to_vmem [thread:$0]  (!%p1304_p9), %s280_s28, 64, %s282_s1, %s268_s13  }
  0x23   : > { %s322_s23 = sshll.u32 %s313_s8, 4  ;;  %s320_s26 = sshll.u32 %s319_s25, 4  ;;  %s323_s23 = int_to_ptr.vmem [resolvable:$true] %s322_s23  ;;  %s321_s26 = int_to_ptr.hbm [resolvable:$true] %s320_s26 }
  0x24   : > { %s1210_s10 = smov 64   ;;  %s1211_s11 = smov 4  }
  0x25   : > { %937 = dma.hbm_to_vmem [thread:$0]  (!%p1304_p9), %s321_s26, 1024, %s323_s23, %s289_s21, %s1210_s10, %s1210_s10, %s1211_s11  }
  0x26   : > { %s342_s17 = scalar_lea.hbm %s1414_s3, %s898_s29  ;;  %s336_s28 = scalar_lea.vmem [#allocation10], %s817_s20 }
  0x27   : > { %s343_s1 = sshll.u32 %s342_s17, 4  ;;  %s345_s16 = sshll.u32 %s336_s28, 4  ;;  %s344_s1 = int_to_ptr.hbm [resolvable:$true] %s343_s1  ;;  %s346_s16 = int_to_ptr.vmem [resolvable:$true] %s345_s16 }
  0x28   : > { %s333_s13 = scalar_lea.sflag [#allocation11], %s1300_s9  ;;  %357 = sbr.rel (%p1318_p12) target bundleno = 244 (0xf4), region = 44 }
  0x29   : > { %940 = dma.hbm_to_vmem [thread:$0]  (!%p1304_p9), %s344_s1, 1024, %s346_s16, %s333_s13, %s1210_s10, %s1210_s10, %s1211_s11  }
  0x2a   : > { %s359_s25 = sand.u32 (!%p1318_p12), 1, %s1192_s22  }
  0x2b   : > { %s824_s8 = sshll.u32 (!%p1318_p12), %s359_s25, 2  ;;  %s360_s23 = scalar_lea.sflag (!%p1318_p12), [#allocation5], %s359_s25 }
  0x2c   : > { %s1342_s26 = scalar_lea.vmem (!%p1318_p12), [#allocation4], %s824_s8 }
  0x2d   : > { %1171 = dma.done.wait (%p1291_p7), %s360_s23, 64  }
  0x2e   : > { %1173 = vsyncadd (%p1291_p7), %s360_s23, 4294967232  ;;  %s369_s9 = sand.u32 1, %s1278_s27   ;;  %s1349_s20 = scalar_lea.vmem [#allocation7], %s824_s8 }
  0x2f   : > { %s370_s12 = scalar_lea.sflag [#allocation8], %s369_s9 }
  0x30   : > { %1175 = dma.done.wait (%p1291_p7), %s370_s12, 1088  }
  0x31   : > { %1177 = vsyncadd (%p1291_p7), %s370_s12, 4294966208  ;;  %s826_s21 = sshll.u32 %s359_s25, 6  ;;  %s390_s30 = scalar_lea.sflag [#allocation11], %s359_s25 }
  0x32   : > { %s1355_s29 = scalar_lea.vmem [#allocation9], %s826_s21  ;;  %s1357_s18 = scalar_lea.vmem [#allocation10], %s826_s21 }
  0x33   : > { %1179 = dma.done.wait (%p1291_p7), %s390_s30, 1024  }
  0x34   : > { %1181 = vsyncadd (%p1291_p7), %s390_s30, 4294966272  ;;  %p828_p13 = scmp.ne.s32.totalorder %s1200_s24, 0 }
  0x36   : > { %450 = sbr.rel (%p828_p13) target bundleno = 62 (0x3e), region = 64 }
  0x3b   : > { %v1212_v0 = vmov 0.0  }
  0x3c   : > { %451 = vst [vmem:[#allocation2] sm:$0xff] %v1212_v0 }
  0x3d   : > { %452 = vst [vmem:[#allocation3] sm:$0xff] %v1212_v0 }
  0x3e PF: > { %v907_v1 = vld [vmem:[%s1355_s29 + $0x38] sm:$0xff]  ;;  %v906_v3 = vld [vmem:[%s1355_s29 + $0x30] sm:$0xff]  ;;  %v905_v5 = vld [vmem:[%s1355_s29 + $0x28] sm:$0xff]  ;;  %p893_p0 = scmp.ne.s32.totalorder %s1200_s24, 1 }
  0x3f   : > { %v915_v2 = vld [vmem:[%s1357_s18 + $0x38] sm:$0xff]  ;;  %519 = vmatpush.bf16.msra.mxu0 %v907_v1  ;;  %v914_v4 = vld [vmem:[%s1357_s18 + $0x30] sm:$0xff]  ;;  %v913_v6 = vld [vmem:[%s1357_s18 + $0x28] sm:$0xff] }
  0x40   : > { %600 = vmatpush.bf16.msra.mxu1 %v915_v2  ;;  %v904_v7 = vld [vmem:[%s1355_s29 + $0x20] sm:$0xff]  ;;  %v903_v9 = vld [vmem:[%s1355_s29 + $0x18] sm:$0xff]  ;;  %v902_v11 = vld [vmem:[%s1355_s29 + $0x10] sm:$0xff] }
  0x41   : > { %v912_v8 = vld [vmem:[%s1357_s18 + $0x20] sm:$0xff]  ;;  %v911_v10 = vld [vmem:[%s1357_s18 + $0x18] sm:$0xff]  ;;  %v910_v12 = vld [vmem:[%s1357_s18 + $0x10] sm:$0xff] }
  0x42   : > { %v901_v13 = vld [vmem:[%s1355_s29 + $0x8] sm:$0xff]  ;;  %v900_v15 = vld [vmem:[%s1355_s29] sm:$0xff]  ;;  %v454_v17 = vld [vmem:[%s1342_s26] sm:$0xf] }
  0x43   : > { %520 = vmatpush.bf16.msra.mxu0 %v906_v3  ;;  %v909_v14 = vld [vmem:[%s1357_s18 + $0x8] sm:$0xff]  ;;  %v908_v16 = vld [vmem:[%s1357_s18] sm:$0xff]  ;;  %v535_v18 = vld [vmem:[%s1349_s20] sm:$0xf] }
  0x44   : > { %601 = vmatpush.bf16.msra.mxu1 %v914_v4  ;;  %v453_v19 = vld [vmem:[#allocation2] sm:$0xff]  ;;  %v534_v20 = vld [vmem:[#allocation3] sm:$0xff] }
  0x47   : > { %521 = vmatpush.bf16.msra.mxu0 %v905_v5 }
  0x48   : > { %602 = vmatpush.bf16.msra.mxu1 %v913_v6 }
  0x4b   : > { %522 = vmatpush.bf16.msra.mxu0 %v904_v7 }
  0x4c   : > { %603 = vmatpush.bf16.msra.mxu1 %v912_v8 }
  0x4f   : > { %523 = vmatpush.bf16.msra.mxu0 %v903_v9 }
  0x50   : > { %604 = vmatpush.bf16.msra.mxu1 %v911_v10 }
  0x53   : > { %524 = vmatpush.bf16.msra.mxu0 %v902_v11 }
  0x54   : > { %605 = vmatpush.bf16.msra.mxu1 %v910_v12 }
  0x57   : > { %525 = vmatpush.bf16.msra.mxu0 %v901_v13 }
  0x58   : > { %606 = vmatpush.bf16.msra.mxu1 %v909_v14 }
  0x5b   : > { %526 = vmatpush.bf16.msra.mxu0 %v900_v15 }
  0x5c   : > { %607 = vmatpush.bf16.msra.mxu1 %v908_v16 }
  0x5e   : > { %527 = vmatmul.bf16.vlgmr.msra.gmra.mxu0 %v454_v17 }
  0x5f   : > { %608 = vmatmul.bf16.vlgmr.msra.gmra.mxu1 %v535_v18 }
  0xdb   : > { %v528_v21 = vpop.f32.mrf.mxu0 }
  0xdc   : > { %v609_v22 = vpop.f32.mrf.mxu1  ;;  %v532_v23 = vadd.f32 %v528_v21, %v453_v19 }
  0xdd   : > { %v613_v24 = vadd.f32 %v609_v22, %v534_v20 }
  0xde   : > { %533 = vst [vmem:[#allocation2] sm:$0xff] %v532_v23 }
  0xdf   : > { %614 = vst [vmem:[#allocation3] sm:$0xff] %v613_v24 }
  0xe0   : > { %618 = sbr.rel (%p893_p0) target bundleno = 238 (0xee), region = 68 }
  0xe3   : > { %v530_v25 = vpop.f32.mrf.mxu0 }
  0xe4   : > { %v611_v26 = vpop.f32.mrf.mxu1 }
  0xe5   : > { %v996_v28 = vld [vmem:[%s1415_s4] ss:$0 sm:$0xff] }
  0xe6   : > { %v620_v27 = vld [vmem:[#allocation3] sm:$0xff]  ;;  %v619_v29 = vld [vmem:[#allocation2] sm:$0xff] }
  0xe7   : > { %v625_v30 = vmul.f32 %v996_v28, %v620_v27  ;;  %v997_v31 = vld [vmem:[%s1416_s5] ss:$0 sm:$0xff] }
  0xe9   : > { %v626_v32 = vadd.f32 %v625_v30, %v619_v29 }
  0xeb   : > { %v631_v33 = vadd.f32 %v997_v31, %v626_v32 }
  0xed   : > { %632 = vst [vmem:[#allocation12] sm:$0xff] %v631_v33 }
  0xee PF: > { %p942_p1 = scmp.eq.s32.totalorder %s1278_s27, 1  ;;  %s644_s15 = sshll.u32 %s1417_s6, 4  ;;  %s645_s15 = int_to_ptr.hbm [resolvable:$true] %s644_s15 }
  0xef   : > { %s1213_s17 = smov [#allocation12]  }
  0xf0   : > { %s642_s1 = sshll.u32 %s1213_s17, 4  ;;  %s643_s1 = int_to_ptr.vmem [resolvable:$true] %s642_s1 }
  0xf1   : > { %925 = dma.vmem_to_hbm [thread:$0]  (%p942_p1), %s643_s1, 128, %s645_s15, [#allocation6]  }
  0xf2   : > { %1183 = dma.done.wait (%p942_p1), [#allocation6], 128  }
  0xf3   : > { %1185 = vsyncadd (%p942_p1), [#allocation6], 4294967168 }
  0xf4 PF: > { %s1432_s28 = sld [smem:[#allocation19_spill]]  ;;  %s1437_s21 = smov %s1192_s22 }
  0xf5   : > { %s1433_s16 = sld [smem:[#allocation17_spill]] }
  0xf6   : > { %s1434_s23 = sld [smem:[#allocation21_spill]] }
  0xf7   : > { %s1435_s24 = sld [smem:[#allocation18_spill]] }
  0xf8   : > { %s1436_s25 = sld [smem:[#allocation20_spill]] }
  0xfa   : > { %s26_s26 = sadd.s32 1, %s1432_s28  }
  0xfb   : > { %p23_p2 = scmp.ge.s32.totalorder %s26_s26, 4   ;;  %s1438_s22 = smov %s1433_s16 }
  0xfd   :  { %25 = sbr.rel (!%p23_p2) target bundleno = 11 (0xb), region = 133 }
 0x102   :  { %658 = vsyncpa [#allocation5], 1 }
 0x103   :  { %660 = vsyncpa [#allocation5 + $0x1], 1 }
 0x104   :  { %661 = vsyncpa [#allocation8], 1 }
 0x105   :  { %663 = vsyncpa [#allocation8 + $0x1], 1 }
 0x106   :  { %664 = vsyncpa [#allocation11], 1 }
 0x107   :  { %666 = vsyncpa [#allocation11 + $0x1], 1 }
 0x108   :  { %667 = vsyncpa [#allocation6], 1 }
 0x109   :  { %669 = vsyncpa [#allocation6 + $0x1], 1 }

</bundles_post_ra>
